<compile_context>
chip_gen: v7x
topology: tpu7x:2x2x1
jax: 0.10.0
libtpu: 0.0.40
codegen_flags: <defaults>
</compile_context>

<pallas_src>
import jax
import jax.numpy as jnp
from jax.experimental import pallas as pl
from jax.experimental.pallas import tpu as pltpu


def _downsample_kernel(e0_ref, o0_ref, e1_ref, o1_ref, e2_ref, o2_ref,
                       w_ref, scale_ref, shift_ref, out_ref):
    """One grid step = one batch element x one tile of output rows.

    e{k}_ref: (1, tH, Wo+1, C)  even-column slab of padded row-phase k
    o{k}_ref: (1, tH, Wo,   C)  odd-column  slab of padded row-phase k
    w_ref:    (9, C, C)         3x3 conv weights, tap-major, (C_in, C_out)
    scale_ref, shift_ref: (1, C)  folded inference BatchNorm affine
    out_ref:  (1, tH, Wo, C)
    """
    _, tH, Wo, C = out_ref.shape

    even_refs = (e0_ref, e1_ref, e2_ref)
    odd_refs = (o0_ref, o1_ref, o2_ref)

    acc = jnp.zeros((tH * Wo, C), jnp.float32)
    for kh in range(3):
        # Taps for kw = 0, 1, 2 — all unit-stride slices of the phase slabs.
        taps = (
            even_refs[kh][0, :, 0:Wo, :],       # padded cols 2j
            odd_refs[kh][0],                    # padded cols 2j + 1
            even_refs[kh][0, :, 1:Wo + 1, :],   # padded cols 2j + 2
        )
        for kw in range(3):
            lhs = taps[kw].reshape(tH * Wo, C)
            acc = acc + jnp.dot(lhs, w_ref[kh * 3 + kw],
                                preferred_element_type=jnp.float32)

    # Fused inference BatchNorm + LeakyReLU(0.01) on the f32 accumulator.
    y = acc * scale_ref[...] + shift_ref[...]
    y = jnp.where(y >= 0, y, 0.01 * y)
    out_ref[0] = y.reshape(tH, Wo, C).astype(out_ref.dtype)


def _pick_row_tile(Ho, Wo, C, itemsize, budget_bytes=6 * 1024 * 1024):
    """Largest divisor of Ho whose double-buffered tiles fit the VMEM budget."""
    per_row = (6 * (Wo + 1) + Wo) * C * itemsize * 2   # inputs + output, 2x buffered
    per_row += Wo * C * 4                              # f32 accumulator
    max_rows = max(1, budget_bytes // max(per_row, 1))
    tile = 1
    for d in range(1, Ho + 1):
        if Ho % d == 0 and d <= max_rows:
            tile = d
    return tile


def downsample_forward(x_nchw, weight, gamma, beta, running_mean, running_var,
                       eps=1e-5):
    """Matches DownSample.forward(x) (inference-mode BatchNorm).

    x_nchw: (N, C, H, W)     weight: (C, C, 3, 3)  (PyTorch OIHW, no bias)
    gamma/beta/running_mean/running_var: (C,)
    returns: (N, C, H//2, W//2)
    """
    N, C, H, W = x_nchw.shape
    assert weight.shape == (C, C, 3, 3)
    assert H % 2 == 0 and W % 2 == 0, "stride-2 downsample expects even H, W"
    Ho, Wo = H // 2, W // 2

    # NCHW -> NHWC (channels on the lane axis) + reflect padding of 1.
    x = jnp.transpose(x_nchw, (0, 2, 3, 1))
    x_pad = jnp.pad(x, ((0, 0), (1, 1), (1, 1), (0, 0)), mode="reflect")

    # Phase-split so every conv tap is an aligned, unit-stride in-kernel slice:
    # padded rows 2i+kh (kh = 0,1,2) x {even, odd} padded columns.
    phase_slabs = []
    for kh in range(3):
        rows = x_pad[:, kh:kh + 2 * Ho:2, :, :]          # (N, Ho, W+2, C)
        even = rows[:, :, 0:2 * Wo + 1:2, :]             # (N, Ho, Wo+1, C)
        odd = rows[:, :, 1:2 * Wo:2, :]                  # (N, Ho, Wo,   C)
        phase_slabs += [even, odd]

    # (C_out, C_in, 3, 3) -> tap-major (9, C_in, C_out): one matmul per tap.
    w_taps = jnp.transpose(weight, (2, 3, 1, 0)).reshape(9, C, C)

    # Fold inference BatchNorm into per-channel scale/shift.
    # TODO(synk): training-mode BatchNorm (batch statistics) would need an
    # extra cross-tile reduction pass; inference semantics are implemented.
    inv_std = 1.0 / jnp.sqrt(running_var.astype(jnp.float32) + eps)
    scale = (gamma.astype(jnp.float32) * inv_std).reshape(1, C)
    shift = (beta.astype(jnp.float32)
             - running_mean.astype(jnp.float32)
             * gamma.astype(jnp.float32) * inv_std).reshape(1, C)

    tile = _pick_row_tile(Ho, Wo, C, x.dtype.itemsize)
    grid = (N, Ho // tile)

    even_spec = pl.BlockSpec((1, tile, Wo + 1, C), lambda n, t: (n, t, 0, 0))
    odd_spec = pl.BlockSpec((1, tile, Wo, C), lambda n, t: (n, t, 0, 0))
    in_specs = [even_spec, odd_spec] * 3 + [
        pl.BlockSpec((9, C, C), lambda n, t: (0, 0, 0)),   # weights stay resident
        pl.BlockSpec((1, C), lambda n, t: (0, 0)),
        pl.BlockSpec((1, C), lambda n, t: (0, 0)),
    ]

    out_nhwc = pl.pallas_call(
        _downsample_kernel,
        out_shape=jax.ShapeDtypeStruct((N, Ho, Wo, C), x.dtype),
        grid_spec=pltpu.PrefetchScalarGridSpec(
            num_scalar_prefetch=0,
            grid=grid,
            in_specs=in_specs,
            out_specs=pl.BlockSpec((1, tile, Wo, C), lambda n, t: (n, t, 0, 0)),
        ),
        compiler_params=pltpu.CompilerParams(
            dimension_semantics=("parallel", "parallel"),
        ),
    )(*phase_slabs, w_taps, scale, shift)

    # NHWC -> NCHW to match the PyTorch output convention.
    # TODO(synk): if the surrounding model can carry NHWC activations, drop the
    # wrapper transposes (an extra HBM pass each for a memory-bound op).
    return jnp.transpose(out_nhwc, (0, 3, 1, 2))


def _reference(x, weight, gamma, beta, mean, var, eps=1e-5):
    """Pure-JAX reference (same math as the PyTorch module, eval-mode BN)."""
    x_pad = jnp.pad(x, ((0, 0), (0, 0), (1, 1), (1, 1)), mode="reflect")
    conv = jax.lax.conv_general_dilated(
        x_pad, weight, window_strides=(2, 2), padding="VALID",
        dimension_numbers=("NCHW", "OIHW", "NCHW"),
        precision=jax.lax.Precision.HIGHEST)
    bn = ((conv - mean[None, :, None, None])
          / jnp.sqrt(var[None, :, None, None] + eps)
          * gamma[None, :, None, None] + beta[None, :, None, None])
    return jnp.where(bn >= 0, bn, 0.01 * bn)


if __name__ == "__main__":
    key = jax.random.PRNGKey(0)
    k1, k2, k3, k4, k5, k6 = jax.random.split(key, 6)

    N, C, H, W = 2, 4, 16, 16

    x = jax.random.normal(k1, (N, C, H, W), dtype=jnp.float32)
    weight = jax.random.normal(k2, (C, C, 3, 3), dtype=jnp.float32) * 0.1
    gamma = 1.0 + 0.1 * jax.random.normal(k3, (C,), dtype=jnp.float32)
    beta = 0.1 * jax.random.normal(k4, (C,), dtype=jnp.float32)
    running_mean = 0.1 * jax.random.normal(k5, (C,), dtype=jnp.float32)
    running_var = 1.0 + 0.1 * jnp.abs(
        jax.random.normal(k6, (C,), dtype=jnp.float32))

    out = downsample_forward(x, weight, gamma, beta, running_mean, running_var)
    out = jax.block_until_ready(out)

    ref = _reference(x, weight, gamma, beta, running_mean, running_var)
    assert out.shape == (N, C, H // 2, W // 2), out.shape
    assert jnp.allclose(out, ref, atol=1e-4, rtol=1e-4), float(
        jnp.max(jnp.abs(out - ref)))

    print("KERNEL_OK")
</pallas_src>

<mosaic_0001>
module attributes {stable_mosaic.version = 11 : i64} {
  func.func @_downsample_kernel(%arg0: i32, %arg1: i32, %arg2: memref<1x8x9x4xf32, #tpu.memory_space<vmem>>, %arg3: memref<1x8x8x4xf32, #tpu.memory_space<vmem>>, %arg4: memref<1x8x9x4xf32, #tpu.memory_space<vmem>>, %arg5: memref<1x8x8x4xf32, #tpu.memory_space<vmem>>, %arg6: memref<1x8x9x4xf32, #tpu.memory_space<vmem>>, %arg7: memref<1x8x8x4xf32, #tpu.memory_space<vmem>>, %arg8: memref<9x4x4xf32, #tpu.memory_space<vmem>>, %arg9: memref<1x4xf32, #tpu.memory_space<vmem>>, %arg10: memref<1x4xf32, #tpu.memory_space<vmem>>, %arg11: memref<1x8x8x4xf32, #tpu.memory_space<vmem>>) attributes {dimension_semantics = [#tpu.dimension_semantics<parallel>, #tpu.dimension_semantics<parallel>], iteration_bounds = array<i64: 2, 1>, scalar_prefetch = 0 : i64, scratch_operands = 0 : i64, tpu.core_type = #tpu.core_type<tc>, window_params = [{transform_indices = @transform_0, window_bounds = array<i64: 1, 8, 9, 4>}, {transform_indices = @transform_1, window_bounds = array<i64: 1, 8, 8, 4>}, {transform_indices = @transform_2, window_bounds = array<i64: 1, 8, 9, 4>}, {transform_indices = @transform_3, window_bounds = array<i64: 1, 8, 8, 4>}, {transform_indices = @transform_4, window_bounds = array<i64: 1, 8, 9, 4>}, {transform_indices = @transform_5, window_bounds = array<i64: 1, 8, 8, 4>}, {pipeline_mode = #tpu.pipeline_mode<synchronous>, transform_indices = @transform_6, window_bounds = array<i64: 9, 4, 4>}, {pipeline_mode = #tpu.pipeline_mode<synchronous>, transform_indices = @transform_7, window_bounds = array<i64: 1, 4>}, {pipeline_mode = #tpu.pipeline_mode<synchronous>, transform_indices = @transform_8, window_bounds = array<i64: 1, 4>}, {transform_indices = @transform_9, window_bounds = array<i64: 1, 8, 8, 4>}]} {
    %cst = arith.constant 0.000000e+00 : f32
    %0 = vector.broadcast %cst : f32 to vector<64x4xf32>
    %c0 = arith.constant 0 : index
    %c0_0 = arith.constant 0 : index
    %c0_1 = arith.constant 0 : index
    %c0_2 = arith.constant 0 : index
    %1 = vector.load %arg2[%c0, %c0_0, %c0_1, %c0_2] : memref<1x8x9x4xf32, #tpu.memory_space<vmem>>, vector<1x8x8x4xf32>
    %2 = vector.shape_cast %1 : vector<1x8x8x4xf32> to vector<8x8x4xf32>
    %c0_3 = arith.constant 0 : index
    %c0_4 = arith.constant 0 : index
    %c0_5 = arith.constant 0 : index
    %c0_6 = arith.constant 0 : index
    %3 = vector.load %arg3[%c0_3, %c0_4, %c0_5, %c0_6] : memref<1x8x8x4xf32, #tpu.memory_space<vmem>>, vector<1x8x8x4xf32>
    %4 = vector.shape_cast %3 : vector<1x8x8x4xf32> to vector<8x8x4xf32>
    %c0_7 = arith.constant 0 : index
    %c0_8 = arith.constant 0 : index
    %c1 = arith.constant 1 : index
    %c0_9 = arith.constant 0 : index
    %5 = vector.load %arg2[%c0_7, %c0_8, %c1, %c0_9] : memref<1x8x9x4xf32, #tpu.memory_space<vmem>>, vector<1x8x8x4xf32>
    %6 = vector.shape_cast %5 : vector<1x8x8x4xf32> to vector<8x8x4xf32>
    %7 = vector.shape_cast %2 : vector<8x8x4xf32> to vector<64x4xf32>
    %c0_10 = arith.constant 0 : index
    %c0_11 = arith.constant 0 : index
    %c0_12 = arith.constant 0 : index
    %8 = vector.load %arg8[%c0_10, %c0_11, %c0_12] : memref<9x4x4xf32, #tpu.memory_space<vmem>>, vector<1x4x4xf32>
    %9 = vector.shape_cast %8 : vector<1x4x4xf32> to vector<4x4xf32>
    %cst_13 = arith.constant dense<0.000000e+00> : vector<64x4xf32>
    %10 = tpu.matmul %7, %9, %cst_13 {dimension_numbers = #tpu.dot_dimension_numbers<[1], [0], [0], [1], [0, 0, 1, 1], [], []>} : vector<64x4xf32>, vector<4x4xf32>, vector<64x4xf32> -> vector<64x4xf32>
    %11 = arith.addf %0, %10 : vector<64x4xf32>
    %12 = vector.shape_cast %4 : vector<8x8x4xf32> to vector<64x4xf32>
    %c1_14 = arith.constant 1 : index
    %c0_15 = arith.constant 0 : index
    %c0_16 = arith.constant 0 : index
    %13 = vector.load %arg8[%c1_14, %c0_15, %c0_16] : memref<9x4x4xf32, #tpu.memory_space<vmem>>, vector<1x4x4xf32>
    %14 = vector.shape_cast %13 : vector<1x4x4xf32> to vector<4x4xf32>
    %cst_17 = arith.constant dense<0.000000e+00> : vector<64x4xf32>
    %15 = tpu.matmul %12, %14, %cst_17 {dimension_numbers = #tpu.dot_dimension_numbers<[1], [0], [0], [1], [0, 0, 1, 1], [], []>} : vector<64x4xf32>, vector<4x4xf32>, vector<64x4xf32> -> vector<64x4xf32>
    %16 = arith.addf %11, %15 : vector<64x4xf32>
    %17 = vector.shape_cast %6 : vector<8x8x4xf32> to vector<64x4xf32>
    %c2 = arith.constant 2 : index
    %c0_18 = arith.constant 0 : index
    %c0_19 = arith.constant 0 : index
    %18 = vector.load %arg8[%c2, %c0_18, %c0_19] : memref<9x4x4xf32, #tpu.memory_space<vmem>>, vector<1x4x4xf32>
    %19 = vector.shape_cast %18 : vector<1x4x4xf32> to vector<4x4xf32>
    %cst_20 = arith.constant dense<0.000000e+00> : vector<64x4xf32>
    %20 = tpu.matmul %17, %19, %cst_20 {dimension_numbers = #tpu.dot_dimension_numbers<[1], [0], [0], [1], [0, 0, 1, 1], [], []>} : vector<64x4xf32>, vector<4x4xf32>, vector<64x4xf32> -> vector<64x4xf32>
    %21 = arith.addf %16, %20 : vector<64x4xf32>
    %c0_21 = arith.constant 0 : index
    %c0_22 = arith.constant 0 : index
    %c0_23 = arith.constant 0 : index
    %c0_24 = arith.constant 0 : index
    %22 = vector.load %arg4[%c0_21, %c0_22, %c0_23, %c0_24] : memref<1x8x9x4xf32, #tpu.memory_space<vmem>>, vector<1x8x8x4xf32>
    %23 = vector.shape_cast %22 : vector<1x8x8x4xf32> to vector<8x8x4xf32>
    %c0_25 = arith.constant 0 : index
    %c0_26 = arith.constant 0 : index
    %c0_27 = arith.constant 0 : index
    %c0_28 = arith.constant 0 : index
    %24 = vector.load %arg5[%c0_25, %c0_26, %c0_27, %c0_28] : memref<1x8x8x4xf32, #tpu.memory_space<vmem>>, vector<1x8x8x4xf32>
    %25 = vector.shape_cast %24 : vector<1x8x8x4xf32> to vector<8x8x4xf32>
    %c0_29 = arith.constant 0 : index
    %c0_30 = arith.constant 0 : index
    %c1_31 = arith.constant 1 : index
    %c0_32 = arith.constant 0 : index
    %26 = vector.load %arg4[%c0_29, %c0_30, %c1_31, %c0_32] : memref<1x8x9x4xf32, #tpu.memory_space<vmem>>, vector<1x8x8x4xf32>
    %27 = vector.shape_cast %26 : vector<1x8x8x4xf32> to vector<8x8x4xf32>
    %28 = vector.shape_cast %23 : vector<8x8x4xf32> to vector<64x4xf32>
    %c3 = arith.constant 3 : index
    %c0_33 = arith.constant 0 : index
    %c0_34 = arith.constant 0 : index
    %29 = vector.load %arg8[%c3, %c0_33, %c0_34] : memref<9x4x4xf32, #tpu.memory_space<vmem>>, vector<1x4x4xf32>
    %30 = vector.shape_cast %29 : vector<1x4x4xf32> to vector<4x4xf32>
    %cst_35 = arith.constant dense<0.000000e+00> : vector<64x4xf32>
    %31 = tpu.matmul %28, %30, %cst_35 {dimension_numbers = #tpu.dot_dimension_numbers<[1], [0], [0], [1], [0, 0, 1, 1], [], []>} : vector<64x4xf32>, vector<4x4xf32>, vector<64x4xf32> -> vector<64x4xf32>
    %32 = arith.addf %21, %31 : vector<64x4xf32>
    %33 = vector.shape_cast %25 : vector<8x8x4xf32> to vector<64x4xf32>
    %c4 = arith.constant 4 : index
    %c0_36 = arith.constant 0 : index
    %c0_37 = arith.constant 0 : index
    %34 = vector.load %arg8[%c4, %c0_36, %c0_37] : memref<9x4x4xf32, #tpu.memory_space<vmem>>, vector<1x4x4xf32>
    %35 = vector.shape_cast %34 : vector<1x4x4xf32> to vector<4x4xf32>
    %cst_38 = arith.constant dense<0.000000e+00> : vector<64x4xf32>
    %36 = tpu.matmul %33, %35, %cst_38 {dimension_numbers = #tpu.dot_dimension_numbers<[1], [0], [0], [1], [0, 0, 1, 1], [], []>} : vector<64x4xf32>, vector<4x4xf32>, vector<64x4xf32> -> vector<64x4xf32>
    %37 = arith.addf %32, %36 : vector<64x4xf32>
    %38 = vector.shape_cast %27 : vector<8x8x4xf32> to vector<64x4xf32>
    %c5 = arith.constant 5 : index
    %c0_39 = arith.constant 0 : index
    %c0_40 = arith.constant 0 : index
    %39 = vector.load %arg8[%c5, %c0_39, %c0_40] : memref<9x4x4xf32, #tpu.memory_space<vmem>>, vector<1x4x4xf32>
    %40 = vector.shape_cast %39 : vector<1x4x4xf32> to vector<4x4xf32>
    %cst_41 = arith.constant dense<0.000000e+00> : vector<64x4xf32>
    %41 = tpu.matmul %38, %40, %cst_41 {dimension_numbers = #tpu.dot_dimension_numbers<[1], [0], [0], [1], [0, 0, 1, 1], [], []>} : vector<64x4xf32>, vector<4x4xf32>, vector<64x4xf32> -> vector<64x4xf32>
    %42 = arith.addf %37, %41 : vector<64x4xf32>
    %c0_42 = arith.constant 0 : index
    %c0_43 = arith.constant 0 : index
    %c0_44 = arith.constant 0 : index
    %c0_45 = arith.constant 0 : index
    %43 = vector.load %arg6[%c0_42, %c0_43, %c0_44, %c0_45] : memref<1x8x9x4xf32, #tpu.memory_space<vmem>>, vector<1x8x8x4xf32>
    %44 = vector.shape_cast %43 : vector<1x8x8x4xf32> to vector<8x8x4xf32>
    %c0_46 = arith.constant 0 : index
    %c0_47 = arith.constant 0 : index
    %c0_48 = arith.constant 0 : index
    %c0_49 = arith.constant 0 : index
    %45 = vector.load %arg7[%c0_46, %c0_47, %c0_48, %c0_49] : memref<1x8x8x4xf32, #tpu.memory_space<vmem>>, vector<1x8x8x4xf32>
    %46 = vector.shape_cast %45 : vector<1x8x8x4xf32> to vector<8x8x4xf32>
    %c0_50 = arith.constant 0 : index
    %c0_51 = arith.constant 0 : index
    %c1_52 = arith.constant 1 : index
    %c0_53 = arith.constant 0 : index
    %47 = vector.load %arg6[%c0_50, %c0_51, %c1_52, %c0_53] : memref<1x8x9x4xf32, #tpu.memory_space<vmem>>, vector<1x8x8x4xf32>
    %48 = vector.shape_cast %47 : vector<1x8x8x4xf32> to vector<8x8x4xf32>
    %49 = vector.shape_cast %44 : vector<8x8x4xf32> to vector<64x4xf32>
    %c6 = arith.constant 6 : index
    %c0_54 = arith.constant 0 : index
    %c0_55 = arith.constant 0 : index
    %50 = vector.load %arg8[%c6, %c0_54, %c0_55] : memref<9x4x4xf32, #tpu.memory_space<vmem>>, vector<1x4x4xf32>
    %51 = vector.shape_cast %50 : vector<1x4x4xf32> to vector<4x4xf32>
    %cst_56 = arith.constant dense<0.000000e+00> : vector<64x4xf32>
    %52 = tpu.matmul %49, %51, %cst_56 {dimension_numbers = #tpu.dot_dimension_numbers<[1], [0], [0], [1], [0, 0, 1, 1], [], []>} : vector<64x4xf32>, vector<4x4xf32>, vector<64x4xf32> -> vector<64x4xf32>
    %53 = arith.addf %42, %52 : vector<64x4xf32>
    %54 = vector.shape_cast %46 : vector<8x8x4xf32> to vector<64x4xf32>
    %c7 = arith.constant 7 : index
    %c0_57 = arith.constant 0 : index
    %c0_58 = arith.constant 0 : index
    %55 = vector.load %arg8[%c7, %c0_57, %c0_58] : memref<9x4x4xf32, #tpu.memory_space<vmem>>, vector<1x4x4xf32>
    %56 = vector.shape_cast %55 : vector<1x4x4xf32> to vector<4x4xf32>
    %cst_59 = arith.constant dense<0.000000e+00> : vector<64x4xf32>
    %57 = tpu.matmul %54, %56, %cst_59 {dimension_numbers = #tpu.dot_dimension_numbers<[1], [0], [0], [1], [0, 0, 1, 1], [], []>} : vector<64x4xf32>, vector<4x4xf32>, vector<64x4xf32> -> vector<64x4xf32>
    %58 = arith.addf %53, %57 : vector<64x4xf32>
    %59 = vector.shape_cast %48 : vector<8x8x4xf32> to vector<64x4xf32>
    %c8 = arith.constant 8 : index
    %c0_60 = arith.constant 0 : index
    %c0_61 = arith.constant 0 : index
    %60 = vector.load %arg8[%c8, %c0_60, %c0_61] : memref<9x4x4xf32, #tpu.memory_space<vmem>>, vector<1x4x4xf32>
    %61 = vector.shape_cast %60 : vector<1x4x4xf32> to vector<4x4xf32>
    %cst_62 = arith.constant dense<0.000000e+00> : vector<64x4xf32>
    %62 = tpu.matmul %59, %61, %cst_62 {dimension_numbers = #tpu.dot_dimension_numbers<[1], [0], [0], [1], [0, 0, 1, 1], [], []>} : vector<64x4xf32>, vector<4x4xf32>, vector<64x4xf32> -> vector<64x4xf32>
    %63 = arith.addf %58, %62 : vector<64x4xf32>
    %c0_63 = arith.constant 0 : index
    %c0_64 = arith.constant 0 : index
    %64 = vector.load %arg9[%c0_63, %c0_64] : memref<1x4xf32, #tpu.memory_space<vmem>>, vector<1x4xf32>
    %65 = vector.broadcast %64 : vector<1x4xf32> to vector<64x4xf32>
    %66 = arith.mulf %63, %65 : vector<64x4xf32>
    %c0_65 = arith.constant 0 : index
    %c0_66 = arith.constant 0 : index
    %67 = vector.load %arg10[%c0_65, %c0_66] : memref<1x4xf32, #tpu.memory_space<vmem>>, vector<1x4xf32>
    %68 = vector.broadcast %67 : vector<1x4xf32> to vector<64x4xf32>
    %69 = arith.addf %66, %68 : vector<64x4xf32>
    %cst_67 = arith.constant 0.000000e+00 : f32
    %70 = vector.broadcast %cst_67 : f32 to vector<64x4xf32>
    %71 = arith.cmpf oge, %69, %70 : vector<64x4xf32>
    %cst_68 = arith.constant 0.00999999977 : f32
    %72 = vector.broadcast %cst_68 : f32 to vector<64x4xf32>
    %73 = arith.mulf %72, %69 : vector<64x4xf32>
    %74 = arith.select %71, %69, %73 : vector<64x4xi1>, vector<64x4xf32>
    %75 = vector.shape_cast %74 : vector<64x4xf32> to vector<8x8x4xf32>
    %c0_69 = arith.constant 0 : index
    %c0_70 = arith.constant 0 : index
    %c0_71 = arith.constant 0 : index
    %c0_72 = arith.constant 0 : index
    %76 = vector.load %arg11[%c0_69, %c0_70, %c0_71, %c0_72] : memref<1x8x8x4xf32, #tpu.memory_space<vmem>>, vector<1x8x8x4xf32>
    %77 = vector.shape_cast %76 : vector<1x8x8x4xf32> to vector<8x8x4xf32>
    %78 = vector.shape_cast %75 : vector<8x8x4xf32> to vector<1x8x8x4xf32>
    tpu.vector_store %arg11[%c0_69, %c0_70, %c0_71, %c0_72], %78 {strides = array<i32>} : memref<1x8x8x4xf32, #tpu.memory_space<vmem>>, vector<1x8x8x4xf32>,
    return
  }
  func.func @transform_0(%arg0: i32, %arg1: i32) -> (i32, i32, i32, i32) {
    %c0_i32 = arith.constant 0 : i32
    %c0_i32_0 = arith.constant 0 : i32
    %c0_i32_1 = arith.constant 0 : i32
    return %arg0, %arg1, %c0_i32, %c0_i32_0 : i32, i32, i32, i32
  }
  func.func @transform_1(%arg0: i32, %arg1: i32) -> (i32, i32, i32, i32) {
    %c0_i32 = arith.constant 0 : i32
    %c0_i32_0 = arith.constant 0 : i32
    %c0_i32_1 = arith.constant 0 : i32
    return %arg0, %arg1, %c0_i32, %c0_i32_0 : i32, i32, i32, i32
  }
  func.func @transform_2(%arg0: i32, %arg1: i32) -> (i32, i32, i32, i32) {
    %c0_i32 = arith.constant 0 : i32
    %c0_i32_0 = arith.constant 0 : i32
    %c0_i32_1 = arith.constant 0 : i32
    return %arg0, %arg1, %c0_i32, %c0_i32_0 : i32, i32, i32, i32
  }
  func.func @transform_3(%arg0: i32, %arg1: i32) -> (i32, i32, i32, i32) {
    %c0_i32 = arith.constant 0 : i32
    %c0_i32_0 = arith.constant 0 : i32
    %c0_i32_1 = arith.constant 0 : i32
    return %arg0, %arg1, %c0_i32, %c0_i32_0 : i32, i32, i32, i32
  }
  func.func @transform_4(%arg0: i32, %arg1: i32) -> (i32, i32, i32, i32) {
    %c0_i32 = arith.constant 0 : i32
    %c0_i32_0 = arith.constant 0 : i32
    %c0_i32_1 = arith.constant 0 : i32
    return %arg0, %arg1, %c0_i32, %c0_i32_0 : i32, i32, i32, i32
  }
  func.func @transform_5(%arg0: i32, %arg1: i32) -> (i32, i32, i32, i32) {
    %c0_i32 = arith.constant 0 : i32
    %c0_i32_0 = arith.constant 0 : i32
    %c0_i32_1 = arith.constant 0 : i32
    return %arg0, %arg1, %c0_i32, %c0_i32_0 : i32, i32, i32, i32
  }
  func.func @transform_6(%arg0: i32, %arg1: i32) -> (i32, i32, i32) {
    %c0_i32 = arith.constant 0 : i32
    %c0_i32_0 = arith.constant 0 : i32
    %c0_i32_1 = arith.constant 0 : i32
    %c0_i32_2 = arith.constant 0 : i32
    return %c0_i32, %c0_i32_0, %c0_i32_1 : i32, i32, i32
  }
  func.func @transform_7(%arg0: i32, %arg1: i32) -> (i32, i32) {
    %c0_i32 = arith.constant 0 : i32
    %c0_i32_0 = arith.constant 0 : i32
    %c0_i32_1 = arith.constant 0 : i32
    return %c0_i32, %c0_i32_0 : i32, i32
  }
  func.func @transform_8(%arg0: i32, %arg1: i32) -> (i32, i32) {
    %c0_i32 = arith.constant 0 : i32
    %c0_i32_0 = arith.constant 0 : i32
    %c0_i32_1 = arith.constant 0 : i32
    return %c0_i32, %c0_i32_0 : i32, i32
  }
  func.func @transform_9(%arg0: i32, %arg1: i32) -> (i32, i32, i32, i32) {
    %c0_i32 = arith.constant 0 : i32
    %c0_i32_0 = arith.constant 0 : i32
    %c0_i32_1 = arith.constant 0 : i32
    return %arg0, %arg1, %c0_i32, %c0_i32_0 : i32, i32, i32, i32
  }
}

</mosaic_0001>

<bundles_post_ra>
// kernel: tpu_custom_call.1
= control target key start
LH: loop header
LB: loop body
LE: loop exit
PB: predicated region body
PF: predicated region fallthrough
CT: control target
= control target key end

     0   :  { %s2634_s30 = smov 0   ;;  %s2636_s10 = smov 0   ;;  %s2926_s0 = inlined_call_operand.vmem [shape: f32[2,8,9,4], index: 0, kind: input, shape index: {}]   ;;  %s2927_s1 = inlined_call_operand.vmem [shape: f32[2,8,8,4], index: 1, kind: input, shape index: {}]   ;;  %s2928_s2 = inlined_call_operand.vmem [shape: f32[2,8,9,4], index: 2, kind: input, shape index: {}]   ;;  %s2929_s3 = inlined_call_operand.vmem [shape: f32[2,8,8,4], index: 3, kind: input, shape index: {}]   ;;  %s2930_s4 = inlined_call_operand.vmem [shape: f32[2,8,9,4], index: 4, kind: input, shape index: {}]   ;;  %s2931_s5 = inlined_call_operand.vmem [shape: f32[2,8,8,4], index: 5, kind: input, shape index: {}]   ;;  %s2932_s6 = inlined_call_operand.vmem [shape: f32[9,4,4], index: 6, kind: input, shape index: {}]   ;;  %s2933_s7 = inlined_call_operand.vmem [shape: f32[1,4], index: 7, kind: input, shape index: {}]   ;;  %s2934_s8 = inlined_call_operand.vmem [shape: f32[1,4], index: 8, kind: input, shape index: {}]   ;;  %s2935_s9 = inlined_call_operand.vmem [shape: f32[2,8,8,4], index: 9, kind: output, shape index: {}]  }
   0x1   :  { %s2638_s11 = smov 0  }
   0x2 LB: > { %s31_s12 = sadd.s32 1, %s2578_s10  ;;  %p2148_p0 = scmp.ge.s32.totalorder %s2582_s11, 1  ;;  %s2582_s11 = sphi %s2638_s11, %s19_s11   ;;  %s2578_s10 = sphi %s2636_s10, %s2937_s10   ;;  %s2574_s30 = sphi %s2634_s30, %s2936_s30  }
   0x3   : > { %p33_p1 = scmp.ge.s32.totalorder %s31_s12, 2  ;;  %p396_p2 = scmp.lt.s32.totalorder %s2582_s11, 3 }
   0x5   : > { %s2939_s12 = smov (%p33_p1, %s31_s12), 0  ;;  %p397_p3 = pnand %p2148_p0, %p396_p2 }
   0x6   : > { %v2163_v0 = vld [vmem:[%s2932_s6 + $0x4] sm:$0xf] (!%p397_p3)  ;;  %vm613_vm0 = vcmask (!%p397_p3), 1043456   ;;  %v2658_v1 = vld [vmem:[%s2932_s6 + $0x10] sm:$0xf] (!%p397_p3)  ;;  %p489_p4 = scmp.lt.s32.totalorder (!%p397_p3), %s2574_s30, 1 }
   0x7   : > { %400 = sbr.rel (%p397_p3) target bundleno = 312 (0x138), region = 56  ;;  %2344 = vmatprep.subr.msk.mxu1 (!%p397_p3), %vm613_vm0, %v2163_v0  ;;  %2400 = vmatprep.subr.msk.mxu0 (!%p397_p3), %vm613_vm0, %v2658_v1  ;;  %v585_v2 = vld [vmem:[%s2932_s6] sm:$0xf] (!%p397_p3)  ;;  %v2212_v3 = vld [vmem:[%s2932_s6 + $0x14] sm:$0xf] (!%p397_p3)  ;;  %vm588_vm1 = vcmask (!%p397_p3), 31744  }
   0x8   : > { %2345 = vmatpush3.msk.msra.mxu1 (!%p397_p3), %vm613_vm0, %v2163_v0  ;;  %2401 = vmatpush3.msk.msra.mxu0 (!%p397_p3), %vm613_vm0, %v2658_v1  ;;  %v2222_v11 = vld [vmem:[%s2932_s6 + $0x18] sm:$0xf] (!%p397_p3)  ;;  %v2182_v13 = vld [vmem:[%s2932_s6 + $0x8] sm:$0xf] (!%p397_p3)  ;;  %v2232_v21 = vld [vmem:[%s2932_s6 + $0x1c] sm:$0xf] (!%p397_p3) }
   0x9   : > { %2358 = vmatprep.subr.msk.mxu1 (!%p397_p3), %vm613_vm0, %v585_v2  ;;  %2414 = vmatprep.subr.msk.mxu0 (!%p397_p3), %vm613_vm0, %v2212_v3  ;;  %v2192_v28 = vld [vmem:[%s2932_s6 + $0xc] sm:$0xf] (!%p397_p3)  ;;  %v2242_v39 = vld [vmem:[%s2932_s6 + $0x20] sm:$0xf] (!%p397_p3) }
   0xe   : > { %s2941_s30 = smov (!%p489_p4, %s2574_s30), 1 }
   0xf   : > { %s2674_s21 = sshll.u32 %s2941_s30, 6  ;;  %s2682_s25 = sshll.u32 %s2941_s30, 7 }
  0x10   : > { %s2680_s24 = scalar_lea.vmem %s2927_s1, %s2674_s21  ;;  %s2691_s28 = scalar_lea.vmem %s2929_s3, %s2674_s21 }
  0x11   : > { %v569_v4 = vld [vmem:[%s2680_s24] sm:$0xff]  ;;  %v570_v5 = vld [vmem:[%s2680_s24 + $0x8] sm:$0xff]  ;;  %v571_v6 = vld [vmem:[%s2680_s24 + $0x10] sm:$0xff]  ;;  %s2702_s13 = scalar_lea.vmem %s2928_s2, %s2682_s25  ;;  %s2731_s20 = scalar_lea.vmem %s2926_s0, %s2682_s25 }
  0x12   : > { %2346 = vmatprep.mubr.msk.f32.mxu1 %vm588_vm1, %v569_v4  ;;  %v1004_v7 = vld [vmem:[%s2691_s28] sm:$0xff]  ;;  %v1005_v8 = vld [vmem:[%s2691_s28 + $0x8] sm:$0xff]  ;;  %v1006_v9 = vld [vmem:[%s2691_s28 + $0x10] sm:$0xff]  ;;  %s2765_s30 = scalar_lea.vmem %s2930_s4, %s2682_s25  ;;  %s2813_s17 = scalar_lea.vmem %s2931_s5, %s2674_s21 }
  0x13   : > { %2347 = vmatmul.mubr.msk.f32.vlgmr.msra.gmra.mrb[0].mxu1 %vm588_vm1, %v570_v5  ;;  %2402 = vmatprep.mubr.msk.f32.mxu0 %vm588_vm1, %v1004_v7  ;;  %v572_v10 = vld [vmem:[%s2680_s24 + $0x18] sm:$0xff]  ;;  %v573_v12 = vld [vmem:[%s2680_s24 + $0x20] sm:$0xff]  ;;  %v574_v16 = vld [vmem:[%s2680_s24 + $0x28] sm:$0xff]  ;;  %s2899_s23 = scalar_lea.vmem %s2935_s9, %s2674_s21 }
  0x14   : > { %2359 = vmatpush3.msk.msra.mxu1 %vm613_vm0, %v585_v2  ;;  %2403 = vmatmul.mubr.msk.f32.vlgmr.msra.gmra.mrb[0].mxu0 %vm588_vm1, %v1005_v8  ;;  %v1007_v14 = vld [vmem:[%s2691_s28 + $0x18] sm:$0xff]  ;;  %v1012_v15 = vld [vmem:[%s2702_s13 + $0x1] sm:$0xff]  ;;  %v575_v17 = vld [vmem:[%s2680_s24 + $0x30] sm:$0xff] }
  0x15   : > { %2349 = vmatprep.mubr.msk.f32.mxu1 %vm588_vm1, %v571_v6  ;;  %2415 = vmatpush3.msk.msra.mxu0 %vm613_vm0, %v2212_v3  ;;  %v1013_v18 = vld [vmem:[%s2702_s13 + $0x11] sm:$0xff]  ;;  %v1014_v19 = vld [vmem:[%s2702_s13 + $0x21] sm:$0xff] }
  0x16   : > { %2405 = vmatprep.mubr.msk.f32.mxu0 %vm588_vm1, %v1006_v9  ;;  %2428 = vmatprep.subr.msk.mxu0 %vm613_vm0, %v2222_v11  ;;  %v576_v20 = vld [vmem:[%s2680_s24 + $0x38] sm:$0xff]  ;;  %v561_v22 = vld [vmem:[%s2731_s20] sm:$0xff]  ;;  %v562_v25 = vld [vmem:[%s2731_s20 + $0x10] sm:$0xff] }
  0x17   : > { %2350 = vmatmul.mubr.msk.f32.gmra.mrb[2].mxu1 %vm588_vm1, %v572_v10  ;;  %2372 = vmatprep.subr.msk.mxu1 %vm613_vm0, %v2182_v13  ;;  %v1015_v23 = vld [vmem:[%s2702_s13 + $0x31] sm:$0xff]  ;;  %v1016_v24 = vld [vmem:[%s2702_s13 + $0x41] sm:$0xff] }
  0x18   : > { %2352 = vmatprep.mubr.msk.f32.mxu1 %vm588_vm1, %v573_v12  ;;  %2406 = vmatmul.mubr.msk.f32.gmra.mrb[2].mxu0 %vm588_vm1, %v1007_v14  ;;  %v563_v26 = vld [vmem:[%s2731_s20 + $0x20] sm:$0xff]  ;;  %v1017_v27 = vld [vmem:[%s2702_s13 + $0x51] sm:$0xff]  ;;  %v1455_v53 = vld [vmem:[%s2813_s17 + $0x8] sm:$0xff] }
  0x19   : > { %2416 = vmatprep.mubr.msk.f32.mxu0 %vm588_vm1, %v1012_v15  ;;  %v1018_v29 = vld [vmem:[%s2702_s13 + $0x61] sm:$0xff]  ;;  %v564_v30 = vld [vmem:[%s2731_s20 + $0x30] sm:$0xff]  ;;  %v1457_v57 = vld [vmem:[%s2813_s17 + $0x18] sm:$0xff] }
  0x1a   : > { %v565_v31 = vld [vmem:[%s2731_s20 + $0x40] sm:$0xff]  ;;  %v1019_v32 = vld [vmem:[%s2702_s13 + $0x71] sm:$0xff]  ;;  %v1459_v61 = vld [vmem:[%s2813_s17 + $0x28] sm:$0xff] }
  0x1b   : > { %2353 = vmatmul.mubr.msk.f32.gmra.mrb[4].mxu1 %vm588_vm1, %v574_v16  ;;  %v1446_v33 = vld [vmem:[%s2765_s30] sm:$0xff]  ;;  %v566_v34 = vld [vmem:[%s2731_s20 + $0x50] sm:$0xff]  ;;  %v1461_v2 = vld [vmem:[%s2813_s17 + $0x38] sm:$0xff] }
  0x1c   : > { %2355 = vmatprep.mubr.msk.f32.mxu1 %vm588_vm1, %v575_v17  ;;  %2417 = vmatmul.mubr.msk.f32.vlgmr.msra.gmra.mrb[0].mxu0 %vm588_vm1, %v1013_v18  ;;  %v567_v35 = vld [vmem:[%s2731_s20 + $0x60] sm:$0xff]  ;;  %v1447_v36 = vld [vmem:[%s2765_s30 + $0x10] sm:$0xff]  ;;  %v1011_v15 = vld [vmem:[%s2691_s28 + $0x38] sm:$0xff] }
  0x1d   : > { %2429 = vmatpush3.msk.msra.mxu0 %vm613_vm0, %v2222_v11  ;;  %2419 = vmatprep.mubr.msk.f32.mxu0 %vm588_vm1, %v1014_v19  ;;  %v1448_v37 = vld [vmem:[%s2765_s30 + $0x20] sm:$0xff]  ;;  %v568_v38 = vld [vmem:[%s2731_s20 + $0x70] sm:$0xff]  ;;  %v1009_v11 = vld [vmem:[%s2691_s28 + $0x28] sm:$0xff] }
  0x1e   : > { %2442 = vmatprep.subr.msk.mxu0 %vm613_vm0, %v2232_v21  ;;  %v577_v40 = vld [vmem:[%s2731_s20 + $0x1] sm:$0xff]  ;;  %v1449_v41 = vld [vmem:[%s2765_s30 + $0x30] sm:$0xff] }
  0x1f   : > { %2356 = vmatmul.mubr.msk.f32.gmra.mrb[6].mxu1 %vm588_vm1, %v576_v20  ;;  %v1450_v42 = vld [vmem:[%s2765_s30 + $0x40] sm:$0xff]  ;;  %v578_v43 = vld [vmem:[%s2731_s20 + $0x11] sm:$0xff] }
  0x20   : > { %2360 = vmatprep.mubr.msk.f32.mxu1 %vm588_vm1, %v561_v22  ;;  %2420 = vmatmul.mubr.msk.f32.gmra.mrb[2].mxu0 %vm588_vm1, %v1015_v23  ;;  %v579_v44 = vld [vmem:[%s2731_s20 + $0x21] sm:$0xff]  ;;  %v1451_v45 = vld [vmem:[%s2765_s30 + $0x50] sm:$0xff]  ;;  %v2252_v22 = vld [vmem:[%s2933_s7] ss:$0 sm:$0xff] }
  0x21   : > { %2422 = vmatprep.mubr.msk.f32.mxu0 %vm588_vm1, %v1016_v24  ;;  %v1452_v46 = vld [vmem:[%s2765_s30 + $0x60] sm:$0xff]  ;;  %v580_v47 = vld [vmem:[%s2731_s20 + $0x31] sm:$0xff] }
  0x22   : > { %v581_v48 = vld [vmem:[%s2731_s20 + $0x41] sm:$0xff]  ;;  %v1453_v49 = vld [vmem:[%s2765_s30 + $0x70] sm:$0xff] }
  0x23   : > { %2361 = vmatmul.mubr.msk.f32.vlgmr.msra.gmra.mrb[0].mxu1 %vm588_vm1, %v562_v25  ;;  %v1454_v50 = vld [vmem:[%s2813_s17] sm:$0xff]  ;;  %v582_v51 = vld [vmem:[%s2731_s20 + $0x51] sm:$0xff] }
  0x24   : > { %2373 = vmatpush3.msk.msra.mxu1 %vm613_vm0, %v2182_v13  ;;  %2363 = vmatprep.mubr.msk.f32.mxu1 %vm588_vm1, %v563_v26  ;;  %v583_v52 = vld [vmem:[%s2731_s20 + $0x61] sm:$0xff]  ;;  %v1456_v54 = vld [vmem:[%s2813_s17 + $0x10] sm:$0xff]  ;;  %v2253_v25 = vld [vmem:[%s2934_s8] ss:$0 sm:$0xff] }
  0x25   : > { %2423 = vmatmul.mubr.msk.f32.gmra.mrb[4].mxu0 %vm588_vm1, %v1017_v27  ;;  %2386 = vmatprep.subr.msk.mxu1 %vm613_vm0, %v2192_v28  ;;  %v584_v55 = vld [vmem:[%s2731_s20 + $0x71] sm:$0xff]  ;;  %v996_v56 = vld [vmem:[%s2702_s13] sm:$0xff] }
  0x26   : > { %2425 = vmatprep.mubr.msk.f32.mxu0 %vm588_vm1, %v1018_v29  ;;  %v1458_v58 = vld [vmem:[%s2813_s17 + $0x20] sm:$0xff]  ;;  %v997_v59 = vld [vmem:[%s2702_s13 + $0x10] sm:$0xff] }
  0x27   : > { %2364 = vmatmul.mubr.msk.f32.gmra.mrb[2].mxu1 %vm588_vm1, %v564_v30  ;;  %v998_v60 = vld [vmem:[%s2702_s13 + $0x20] sm:$0xff]  ;;  %v1460_v62 = vld [vmem:[%s2813_s17 + $0x30] sm:$0xff] }
  0x28   : > { %2366 = vmatprep.mubr.msk.f32.mxu1 %vm588_vm1, %v565_v31  ;;  %v999_v63 = vld [vmem:[%s2702_s13 + $0x30] sm:$0xff]  ;;  %v1000_v0 = vld [vmem:[%s2702_s13 + $0x40] sm:$0xff] }
  0x29   : > { %2426 = vmatmul.mubr.msk.f32.gmra.mrb[6].mxu0 %vm588_vm1, %v1019_v32  ;;  %v1462_v3 = vld [vmem:[%s2765_s30 + $0x1] sm:$0xff]  ;;  %v1463_v5 = vld [vmem:[%s2765_s30 + $0x11] sm:$0xff] }
  0x2a   : > { %2430 = vmatprep.mubr.msk.f32.mxu0 %vm588_vm1, %v1446_v33  ;;  %v1002_v4 = vld [vmem:[%s2702_s13 + $0x60] sm:$0xff]  ;;  %v1003_v7 = vld [vmem:[%s2702_s13 + $0x70] sm:$0xff] }
  0x2b   : > { %2367 = vmatmul.mubr.msk.f32.gmra.mrb[4].mxu1 %vm588_vm1, %v566_v34  ;;  %v1464_v6 = vld [vmem:[%s2765_s30 + $0x21] sm:$0xff]  ;;  %v1465_v9 = vld [vmem:[%s2765_s30 + $0x31] sm:$0xff] }
  0x2c   : > { %2369 = vmatprep.mubr.msk.f32.mxu1 %vm588_vm1, %v567_v35  ;;  %v1008_v8 = vld [vmem:[%s2691_s28 + $0x20] sm:$0xff]  ;;  %v1010_v12 = vld [vmem:[%s2691_s28 + $0x30] sm:$0xff] }
  0x2d   : > { %2431 = vmatmul.mubr.msk.f32.vlgmr.msra.gmra.mrb[0].mxu0 %vm588_vm1, %v1447_v36  ;;  %v1466_v10 = vld [vmem:[%s2765_s30 + $0x41] sm:$0xff]  ;;  %v1467_v13 = vld [vmem:[%s2765_s30 + $0x51] sm:$0xff] }
  0x2e   : > { %2443 = vmatpush3.msk.msra.mxu0 %vm613_vm0, %v2232_v21  ;;  %2433 = vmatprep.mubr.msk.f32.mxu0 %vm588_vm1, %v1448_v37  ;;  %v1468_v14 = vld [vmem:[%s2765_s30 + $0x61] sm:$0xff]  ;;  %v1469_v16 = vld [vmem:[%s2765_s30 + $0x71] sm:$0xff] }
  0x2f   : > { %2370 = vmatmul.mubr.msk.f32.gmra.mrb[6].mxu1 %vm588_vm1, %v568_v38  ;;  %2456 = vmatprep.subr.msk.mxu0 %vm613_vm0, %v2242_v39 }
  0x30   : > { %2374 = vmatprep.mubr.msk.f32.mxu1 %vm588_vm1, %v577_v40 }
  0x31   : > { %2434 = vmatmul.mubr.msk.f32.gmra.mrb[2].mxu0 %vm588_vm1, %v1449_v41 }
  0x32   : > { %2436 = vmatprep.mubr.msk.f32.mxu0 %vm588_vm1, %v1450_v42 }
  0x33   : > { %2375 = vmatmul.mubr.msk.f32.vlgmr.msra.gmra.mrb[0].mxu1 %vm588_vm1, %v578_v43 }
  0x34   : > { %2387 = vmatpush3.msk.msra.mxu1 %vm613_vm0, %v2192_v28  ;;  %2377 = vmatprep.mubr.msk.f32.mxu1 %vm588_vm1, %v579_v44 }
  0x35   : > { %2437 = vmatmul.mubr.msk.f32.gmra.mrb[4].mxu0 %vm588_vm1, %v1451_v45  ;;  %2470 = vmatprep.subr.msk.mxu1 %vm613_vm0, %v2658_v1 }
  0x36   : > { %2439 = vmatprep.mubr.msk.f32.mxu0 %vm588_vm1, %v1452_v46 }
  0x37   : > { %2378 = vmatmul.mubr.msk.f32.gmra.mrb[2].mxu1 %vm588_vm1, %v580_v47 }
  0x38   : > { %2380 = vmatprep.mubr.msk.f32.mxu1 %vm588_vm1, %v581_v48 }
  0x39   : > { %2440 = vmatmul.mubr.msk.f32.gmra.mrb[6].mxu0 %vm588_vm1, %v1453_v49 }
  0x3a   : > { %2444 = vmatprep.mubr.msk.f32.mxu0 %vm588_vm1, %v1454_v50 }
  0x3b   : > { %2381 = vmatmul.mubr.msk.f32.gmra.mrb[4].mxu1 %vm588_vm1, %v582_v51 }
  0x3c   : > { %2383 = vmatprep.mubr.msk.f32.mxu1 %vm588_vm1, %v583_v52 }
  0x3d   : > { %2445 = vmatmul.mubr.msk.f32.vlgmr.msra.gmra.mrb[0].mxu0 %vm588_vm1, %v1455_v53 }
  0x3e   : > { %2457 = vmatpush3.msk.msra.mxu0 %vm613_vm0, %v2242_v39  ;;  %2447 = vmatprep.mubr.msk.f32.mxu0 %vm588_vm1, %v1456_v54 }
  0x3f   : > { %2384 = vmatmul.mubr.msk.f32.gmra.mrb[6].mxu1 %vm588_vm1, %v584_v55 }
  0x40   : > { %2388 = vmatprep.mubr.msk.f32.mxu1 %vm588_vm1, %v996_v56 }
  0x41   : > { %2448 = vmatmul.mubr.msk.f32.gmra.mrb[2].mxu0 %vm588_vm1, %v1457_v57 }
  0x42   : > { %2450 = vmatprep.mubr.msk.f32.mxu0 %vm588_vm1, %v1458_v58 }
  0x43   : > { %2389 = vmatmul.mubr.msk.f32.vlgmr.msra.gmra.mrb[0].mxu1 %vm588_vm1, %v997_v59 }
  0x44   : > { %2471 = vmatpush3.msk.msra.mxu1 %vm613_vm0, %v2658_v1  ;;  %2391 = vmatprep.mubr.msk.f32.mxu1 %vm588_vm1, %v998_v60  ;;  %v1001_v1 = vld [vmem:[%s2702_s13 + $0x50] sm:$0xff] }
  0x45   : > { %2451 = vmatmul.mubr.msk.f32.gmra.mrb[4].mxu0 %vm588_vm1, %v1459_v61 }
  0x46   : > { %2453 = vmatprep.mubr.msk.f32.mxu0 %vm588_vm1, %v1460_v62 }
  0x47   : > { %2392 = vmatmul.mubr.msk.f32.gmra.mrb[2].mxu1 %vm588_vm1, %v999_v63 }
  0x48   : > { %2394 = vmatprep.mubr.msk.f32.mxu1 %vm588_vm1, %v1000_v0 }
  0x49   : > { %2454 = vmatmul.mubr.msk.f32.gmra.mrb[6].mxu0 %vm588_vm1, %v1461_v2 }
  0x4a   : > { %2458 = vmatprep.mubr.msk.f32.mxu0 %vm588_vm1, %v1462_v3 }
  0x4b   : > { %2395 = vmatmul.mubr.msk.f32.gmra.mrb[4].mxu1 %vm588_vm1, %v1001_v1 }
  0x4c   : > { %2397 = vmatprep.mubr.msk.f32.mxu1 %vm588_vm1, %v1002_v4 }
  0x4d   : > { %2459 = vmatmul.mubr.msk.f32.vlgmr.msra.gmra.mrb[0].mxu0 %vm588_vm1, %v1463_v5 }
  0x4e   : > { %2461 = vmatprep.mubr.msk.f32.mxu0 %vm588_vm1, %v1464_v6 }
  0x4f   : > { %2398 = vmatmul.mubr.msk.f32.gmra.mrb[6].mxu1 %vm588_vm1, %v1003_v7 }
  0x50   : > { %2408 = vmatprep.mubr.msk.f32.mxu1 %vm588_vm1, %v1008_v8 }
  0x51   : > { %2462 = vmatmul.mubr.msk.f32.gmra.mrb[2].mxu0 %vm588_vm1, %v1465_v9 }
  0x52   : > { %2464 = vmatprep.mubr.msk.f32.mxu0 %vm588_vm1, %v1466_v10 }
  0x53   : > { %2409 = vmatmul.mubr.msk.f32.vlgmr.msra.gmra.mrb[4].mxu1 %vm588_vm1, %v1009_v11 }
  0x54   : > { %2411 = vmatprep.mubr.msk.f32.mxu1 %vm588_vm1, %v1010_v12 }
  0x55   : > { %2465 = vmatmul.mubr.msk.f32.gmra.mrb[4].mxu0 %vm588_vm1, %v1467_v13 }
  0x56   : > { %2467 = vmatprep.mubr.msk.f32.mxu0 %vm588_vm1, %v1468_v14 }
  0x57   : > { %2412 = vmatmul.mubr.msk.f32.gmra.mrb[6].mxu1 %vm588_vm1, %v1011_v15 }
  0x59   : > { %2468 = vmatmul.mubr.msk.f32.gmra.mrb[6].mxu0 %vm588_vm1, %v1469_v16 }
 0x116   : > { %v2390_v17 = vpop.f32.mrb[0].mxu1 }
 0x117   : > { %v1115_v18 = vpop.f32.mrb[1].mxu1 }
 0x11a   : > { %v2393_v19 = vpop.f32.mrb[2].mxu1 }
 0x11b   : > { %v1125_v20 = vpop.f32.mrb[3].mxu1 }
 0x120   : > { %v2460_v21 = vpop.f32.mrb[0].mxu0 }
 0x121   : > { %v2472_v23 = vadd.f32 %v2460_v21, %v2390_v17  ;;  %v1849_v24 = vpop.f32.mrb[1].mxu0 }
 0x122   : > { %v2473_v26 = vadd.f32 %v1849_v24, %v1115_v18 }
 0x123   : > { %v1904_v27 = vmul.f32 %v2472_v23, %v2252_v22 }
 0x124   : > { %v1903_v28 = vmul.f32 %v2473_v26, %v2252_v22  ;;  %v2463_v29 = vpop.f32.mrb[2].mxu0 }
 0x125   : > { %v1919_v30 = vadd.f32 %v2253_v25, %v1904_v27  ;;  %v2474_v31 = vadd.f32 %v2463_v29, %v2393_v19  ;;  %v1859_v32 = vpop.f32.mrb[3].mxu0 }
 0x126   : > { %v1918_v33 = vadd.f32 %v2253_v25, %v1903_v28  ;;  %v2475_v34 = vadd.f32 %v1859_v32, %v1125_v20  ;;  %v2410_v35 = vpop.f32.mrb[4].mxu1 }
 0x127   : > { %vm1927_vm2 = vcmp.ge.f32.partialorder %v1919_v30, 0.0  ;;  %v1935_v36 = vmul.f32 0.01, %v1919_v30  ;;  %v1906_v37 = vmul.f32 %v2474_v31, %v2252_v22  ;;  %v1277_v38 = vpop.f32.mrb[5].mxu1 }
 0x128   : > { %vm1926_vm3 = vcmp.ge.f32.partialorder %v1918_v33, 0.0  ;;  %v1934_v39 = vmul.f32 0.01, %v1918_v33  ;;  %v1905_v40 = vmul.f32 %v2475_v34, %v2252_v22  ;;  %v2466_v41 = vpop.f32.mrb[4].mxu0 }
 0x129   : > { %v1943_v42 = vsel %vm1927_vm2, %v1919_v30, %v1935_v36  ;;  %v1921_v43 = vadd.f32 %v2253_v25, %v1906_v37  ;;  %v2476_v44 = vadd.f32 %v2466_v41, %v2410_v35  ;;  %v1869_v45 = vpop.f32.mrb[5].mxu0 }
 0x12a   : > { %1951 = vst.msk [vmem:[%s2899_s23 + $0x8] sm:$0xff] %vm588_vm1, %v1943_v42  ;;  %v1942_v46 = vsel %vm1926_vm3, %v1918_v33, %v1934_v39  ;;  %v1920_v47 = vadd.f32 %v2253_v25, %v1905_v40  ;;  %v2477_v48 = vadd.f32 %v1869_v45, %v1277_v38  ;;  %v2413_v49 = vpop.f32.mrb[6].mxu1 }
 0x12b   : > { %1950 = vst.msk [vmem:[%s2899_s23] sm:$0xff] %vm588_vm1, %v1942_v46  ;;  %vm1929_vm4 = vcmp.ge.f32.partialorder %v1921_v43, 0.0  ;;  %v1937_v50 = vmul.f32 0.01, %v1921_v43  ;;  %v1908_v51 = vmul.f32 %v2476_v44, %v2252_v22  ;;  %v1287_v52 = vpop.f32.mrb[7].mxu1 }
 0x12c   : > { %vm1928_vm5 = vcmp.ge.f32.partialorder %v1920_v47, 0.0  ;;  %v1936_v53 = vmul.f32 0.01, %v1920_v47  ;;  %v1907_v54 = vmul.f32 %v2477_v48, %v2252_v22  ;;  %v2469_v55 = vpop.f32.mrb[6].mxu0 }
 0x12d   : > { %v1945_v56 = vsel %vm1929_vm4, %v1921_v43, %v1937_v50  ;;  %v1923_v57 = vadd.f32 %v2253_v25, %v1908_v51  ;;  %v2478_v58 = vadd.f32 %v2469_v55, %v2413_v49  ;;  %v1879_v59 = vpop.f32.mrb[7].mxu0 }
 0x12e   : > { %1953 = vst.msk [vmem:[%s2899_s23 + $0x18] sm:$0xff] %vm588_vm1, %v1945_v56  ;;  %v1944_v60 = vsel %vm1928_vm5, %v1920_v47, %v1936_v53  ;;  %v1922_v61 = vadd.f32 %v2253_v25, %v1907_v54  ;;  %v2479_v62 = vadd.f32 %v1879_v59, %v1287_v52 }
 0x12f   : > { %1952 = vst.msk [vmem:[%s2899_s23 + $0x10] sm:$0xff] %vm588_vm1, %v1944_v60  ;;  %vm1931_vm6 = vcmp.ge.f32.partialorder %v1923_v57, 0.0  ;;  %v1939_v63 = vmul.f32 0.01, %v1923_v57  ;;  %v1910_v0 = vmul.f32 %v2478_v58, %v2252_v22 }
 0x130   : > { %vm1930_vm7 = vcmp.ge.f32.partialorder %v1922_v61, 0.0  ;;  %v1938_v2 = vmul.f32 0.01, %v1922_v61  ;;  %v1909_v3 = vmul.f32 %v2479_v62, %v2252_v22 }
 0x131   : > { %v1947_v1 = vsel %vm1931_vm6, %v1923_v57, %v1939_v63  ;;  %v1925_v4 = vadd.f32 %v2253_v25, %v1910_v0 }
 0x132   : > { %1955 = vst.msk [vmem:[%s2899_s23 + $0x28] sm:$0xff] %vm588_vm1, %v1947_v1  ;;  %v1946_v5 = vsel %vm1930_vm7, %v1922_v61, %v1938_v2  ;;  %v1924_v6 = vadd.f32 %v2253_v25, %v1909_v3 }
 0x133   : > { %1954 = vst.msk [vmem:[%s2899_s23 + $0x20] sm:$0xff] %vm588_vm1, %v1946_v5  ;;  %vm1933_vm8 = vcmp.ge.f32.partialorder %v1925_v4, 0.0  ;;  %v1941_v7 = vmul.f32 0.01, %v1925_v4 }
 0x134   : > { %vm1932_vm9 = vcmp.ge.f32.partialorder %v1924_v6, 0.0  ;;  %v1940_v8 = vmul.f32 0.01, %v1924_v6 }
 0x135   : > { %v1949_v9 = vsel %vm1933_vm8, %v1925_v4, %v1941_v7 }
 0x136   : > { %1957 = vst.msk [vmem:[%s2899_s23 + $0x38] sm:$0xff] %vm588_vm1, %v1949_v9  ;;  %v1948_v10 = vsel %vm1932_vm9, %v1924_v6, %v1940_v8 }
 0x137   : > { %1956 = vst.msk [vmem:[%s2899_s23 + $0x30] sm:$0xff] %vm588_vm1, %v1948_v10 }
 0x138 PF: > { %s19_s11 = sadd.s32 1, %s2582_s11   ;;  %s2936_s30 = smov %s2578_s10 }
 0x139   : > { %p16_p5 = scmp.ge.s32.totalorder %s19_s11, 4   ;;  %s2937_s10 = smov %s2939_s12 }
 0x13b   :  { %18 = sbr.rel (!%p16_p5) target bundleno = 2 (0x2), region = 109 }

</bundles_post_ra>
